<compile_context>
chip_gen: v6e
topology: v6e:2x2x1
jax: 0.10.0
libtpu: 0.0.40
codegen_flags: <defaults>
</compile_context>

<pallas_src>
import functools

import jax
import jax.numpy as jnp
import numpy as np
from jax.experimental import pallas as pl
from jax.experimental.pallas import tpu as pltpu

_LANES = 128


# ----------------------------------------------------------------------------
# Kernel 1: interval_preds_to_hazard
#   preds (K, TILE_N)  [intervals on sublanes, batch on lanes]
#   breaks_norm (K,)   [SMEM, already divided by breaks.max()]
#   out (1, TILE_N)    [lane-dense hazards]
#   prev_0 = 1, prev_j = prod_{i<j} (1 - preds_i)
#   hazard = 1 - sum_j breaks_norm_j * preds_j * prev_j
# ----------------------------------------------------------------------------
def _hazard_kernel(breaks_ref, preds_ref, out_ref):
    k, tn = preds_ref.shape
    running = jnp.ones((1, tn), jnp.float32)   # exclusive cumulative product
    acc = jnp.zeros((1, tn), jnp.float32)
    # K is small and static -> unrolled loop over full lane-dense (1, TILE_N) rows.
    for j in range(k):
        pj = preds_ref[pl.ds(j, 1), :]                    # (1, TILE_N)
        acc = acc + breaks_ref[j] * pj * running          # SMEM scalar * vector
        running = running * (1.0 - pj)
    out_ref[...] = 1.0 - acc                              # lane-dense store


def hazard_from_intervals(preds2d, breaks_norm):
    n, k = preds2d.shape
    npad = ((n + _LANES - 1) // _LANES) * _LANES
    tile = min(npad, 2048)
    while npad % tile:
        tile -= _LANES

    # transpose so batch sits on lanes; pad lanes with zeros (hazard=1, sliced off)
    pt = jnp.zeros((k, npad), jnp.float32).at[:, :n].set(
        preds2d.astype(jnp.float32).T)

    out = pl.pallas_call(
        _hazard_kernel,
        grid=(npad // tile,),
        in_specs=[
            pl.BlockSpec(memory_space=pltpu.MemorySpace.SMEM),   # breaks (K,)
            pl.BlockSpec((k, tile), lambda i: (0, i)),
        ],
        out_specs=pl.BlockSpec((1, tile), lambda i: (0, i)),
        out_shape=jax.ShapeDtypeStruct((1, npad), jnp.float32),
        compiler_params=pltpu.CompilerParams(
            dimension_semantics=("parallel",),    # batch tiles are independent
            vmem_limit_bytes=32 * 1024 * 1024,
        ),
    )(breaks_norm.astype(jnp.float32), pt)
    return out[0, :n]


# ----------------------------------------------------------------------------
# Kernel 2: Cox partial-likelihood loss on sorted, gamma-shifted hazards.
#   p (rows, 128): preds - gamma (padding = -1e30 -> exp = 0)
#   e (rows, 128): events (padding = 0)
#   tri (128,128): tri[j, i] = 1 if j <= i   (within-row lane cumsum)
#   excl (R, R):   excl[r, r'] = 1 if r' < r (exclusive prefix of row sums)
#   carry/num/den: SMEM scalars carried across the "arbitrary" grid axis.
#   loss = -sum((p - log(cumsum(exp(p)) + eps)) * e) / (sum(e) + eps)
#   (gamma cancels:  preds - lcs == (preds - gamma) - log(cumsum + eps))
# ----------------------------------------------------------------------------
def _cox_kernel(p_ref, e_ref, tri_ref, excl_ref, out_ref,
                carry_ref, num_ref, den_ref, *, eps):
    step = pl.program_id(0)

    @pl.when(step == 0)
    def _():
        carry_ref[0] = 0.0
        num_ref[0] = 0.0
        den_ref[0] = 0.0

    p = p_ref[...]                                        # (R, 128)
    e = e_ref[...]                                        # (R, 128)
    z = jnp.exp(p)                                        # padding -> 0

    # within-row (lane-axis) inclusive cumsum on the MXU, constant mask
    zc = jnp.dot(z, tri_ref[...], preferred_element_type=jnp.float32)
    s = zc[:, _LANES - 1:_LANES]                          # (R, 1) row totals
    # exclusive prefix of row totals within this tile (tiny constant-mask matmul)
    off = jnp.dot(excl_ref[...], s, preferred_element_type=jnp.float32)

    csum = zc + off + carry_ref[0]                        # global inclusive cumsum
    lcs = jnp.log(csum + eps)                             # gamma folded out
    num_ref[0] += jnp.sum((p - lcs) * e)
    den_ref[0] += jnp.sum(e)
    carry_ref[0] += jnp.sum(s)

    # value after the last grid step is the loss
    out_ref[...] = jnp.broadcast_to(-num_ref[0] / (den_ref[0] + eps), (1, 1))


@functools.lru_cache(maxsize=None)
def _cox_masks(rows):
    tri = np.triu(np.ones((_LANES, _LANES), dtype=np.float32))      # j <= i
    excl = np.tril(np.ones((rows, rows), dtype=np.float32), -1)     # r' < r
    return jnp.asarray(tri), jnp.asarray(excl)


def cox_loss(preds_sorted, events_sorted, eps):
    n = preds_sorted.shape[0]
    # 64 sublane rows (8192 elems) per grid step for big N, 8 rows otherwise
    rows = 64 if n >= 64 * _LANES else 8
    chunk = rows * _LANES
    npad = ((n + chunk - 1) // chunk) * chunk
    nb = npad // _LANES

    gamma = jnp.max(preds_sorted)                 # global max done in the wrapper
    p = jnp.full((npad,), -1e30, jnp.float32).at[:n].set(
        preds_sorted.astype(jnp.float32) - gamma)
    e = jnp.zeros((npad,), jnp.float32).at[:n].set(
        events_sorted.astype(jnp.float32))
    p2 = p.reshape(nb, _LANES)
    e2 = e.reshape(nb, _LANES)
    tri, excl = _cox_masks(rows)

    out = pl.pallas_call(
        functools.partial(_cox_kernel, eps=eps),
        grid=(nb // rows,),
        in_specs=[
            pl.BlockSpec((rows, _LANES), lambda i: (i, 0)),
            pl.BlockSpec((rows, _LANES), lambda i: (i, 0)),
            pl.BlockSpec((_LANES, _LANES), lambda i: (0, 0)),   # resident constant
            pl.BlockSpec((rows, rows), lambda i: (0, 0)),       # resident constant
        ],
        out_specs=pl.BlockSpec((1, 1), lambda i: (0, 0)),
        out_shape=jax.ShapeDtypeStruct((1, 1), jnp.float32),
        scratch_shapes=[
            pltpu.SMEM((1,), jnp.float32),   # running cumsum carry
            pltpu.SMEM((1,), jnp.float32),   # numerator accumulator
            pltpu.SMEM((1,), jnp.float32),   # denominator accumulator
        ],
        compiler_params=pltpu.CompilerParams(
            dimension_semantics=("arbitrary",),   # cumsum carries state
            vmem_limit_bytes=32 * 1024 * 1024,
        ),
    )(p2, e2, tri, excl)
    return out[0, 0]


# ----------------------------------------------------------------------------
# Module wrapper (mirrors the PyTorch CoxPHLoss semantics)
# ----------------------------------------------------------------------------
class CoxPHLoss:
    def __init__(self, eps=1e-6, num_intervals=20, interval_duration=6.0, ticks=None):
        self.eps = float(eps)
        if ticks:
            self.intervals = jnp.asarray(ticks[:-1], dtype=jnp.float32)
            self.num_intervals = int(self.intervals.shape[0])
        else:
            self.num_intervals = num_intervals
            self.intervals = (
                jnp.arange(num_intervals, dtype=jnp.float32) * interval_duration
            )
        # pre-normalize once (module constant): removes the in-kernel max + divide
        self.breaks_norm = self.intervals / jnp.max(self.intervals)

    def __call__(self, preds, events, durations):
        if preds.ndim != 1:
            assert preds.shape[1] == self.num_intervals
            preds = hazard_from_intervals(preds, self.breaks_norm)   # Pallas kernel 1
        # TODO(synk): descending sort + gather stays in plain JAX glue (no clean
        # TPU Pallas sort primitive); for tied durations the stable argsort order
        # may differ from torch's descending sort, slightly changing the risk set.
        sort_idx = jnp.argsort(-durations)
        events_s = events[sort_idx].astype(jnp.float32).reshape(-1)
        preds_s = preds[sort_idx].reshape(-1)
        return cox_loss(preds_s, events_s, self.eps)                 # Pallas kernel 2


# ----------------------------------------------------------------------------
# Pure-JAX reference (for correctness check)
# ----------------------------------------------------------------------------
def reference_loss(preds, events, durations, intervals, eps):
    if preds.ndim != 1:
        prev = jnp.cumprod(1.0 - preds[:, :-1], axis=1)
        prev = jnp.concatenate(
            [jnp.ones((preds.shape[0], 1), jnp.float32), prev], axis=1
        )
        surv = jnp.sum(intervals * preds * prev, axis=1) / jnp.max(intervals)
        preds = 1.0 - surv
    idx = jnp.argsort(-durations)
    e = events[idx].astype(jnp.float32)
    p = preds[idx]
    gamma = jnp.max(p)
    lcs = jnp.log(jnp.cumsum(jnp.exp(p - gamma)) + eps) + gamma
    return -jnp.sum((p - lcs) * e) / (jnp.sum(e) + eps)


if __name__ == "__main__":
    K = 20
    loss_fn = CoxPHLoss(eps=1e-6, num_intervals=K, interval_duration=6.0)

    def check(preds, events, durations):
        got = jax.block_until_ready(loss_fn(preds, events, durations))
        ref = jax.block_until_ready(
            reference_loss(preds, events, durations, loss_fn.intervals, loss_fn.eps)
        )
        assert np.allclose(np.asarray(got), np.asarray(ref), rtol=1e-3, atol=1e-3), (
            float(got),
            float(ref),
        )

    # 1) interval predictions, tiny batch (single grid step in both kernels)
    k1, k2, k3 = jax.random.split(jax.random.PRNGKey(0), 3)
    N = 8
    preds = jax.nn.sigmoid(jax.random.normal(k1, (N, K), dtype=jnp.float32))
    events = (jax.random.uniform(k2, (N,)) > 0.5).astype(jnp.float32)
    durations = jax.random.uniform(k3, (N,), dtype=jnp.float32) * 120.0
    check(preds, events, durations)

    # 2) interval predictions, larger batch: multi-step hazard grid (parallel)
    #    and multi-step cox grid (exercises the SMEM cumsum carry).
    k4, k5, k6 = jax.random.split(jax.random.PRNGKey(1), 3)
    N2 = 2500
    preds2 = jax.nn.sigmoid(jax.random.normal(k4, (N2, K), dtype=jnp.float32))
    events2 = (jax.random.uniform(k5, (N2,)) > 0.5).astype(jnp.float32)
    durations2 = jax.random.uniform(k6, (N2,), dtype=jnp.float32) * 120.0
    check(preds2, events2, durations2)

    # 3) already-flattened hazard predictions (skips the hazard kernel)
    k7, k8, k9 = jax.random.split(jax.random.PRNGKey(2), 3)
    N3 = 50
    preds3 = jax.nn.sigmoid(jax.random.normal(k7, (N3,), dtype=jnp.float32))
    events3 = (jax.random.uniform(k8, (N3,)) > 0.5).astype(jnp.float32)
    durations3 = jax.random.uniform(k9, (N3,), dtype=jnp.float32) * 120.0
    check(preds3, events3, durations3)

    print("KERNEL_OK")
</pallas_src>

<mosaic_0001>
module attributes {stable_mosaic.version = 11 : i64} {
  func.func @_hazard_kernel(%arg0: i32, %arg1: memref<20xf32, #tpu.memory_space<smem>>, %arg2: memref<20x128xf32, #tpu.memory_space<vmem>>, %arg3: memref<1x128xf32, #tpu.memory_space<vmem>>) attributes {dimension_semantics = [#tpu.dimension_semantics<parallel>], iteration_bounds = array<i64: 1>, scalar_prefetch = 0 : i64, scratch_operands = 0 : i64, tpu.core_type = #tpu.core_type<tc>, window_params = [{transform_indices = @transform_0, window_bounds = array<i64: 20>}, {transform_indices = @transform_1, window_bounds = array<i64: 20, 128>}, {transform_indices = @transform_2, window_bounds = array<i64: 1, 128>}]} {
    %cst = arith.constant 1.000000e+00 : f32
    %0 = vector.broadcast %cst : f32 to vector<1x128xf32>
    %cst_0 = arith.constant 0.000000e+00 : f32
    %1 = vector.broadcast %cst_0 : f32 to vector<1x128xf32>
    %c0 = arith.constant 0 : index
    %c0_1 = arith.constant 0 : index
    %2 = vector.load %arg2[%c0, %c0_1] : memref<20x128xf32, #tpu.memory_space<vmem>>, vector<1x128xf32>
    %c0_2 = arith.constant 0 : index
    %3 = memref.load %arg1[%c0_2] : memref<20xf32, #tpu.memory_space<smem>>
    %4 = vector.broadcast %3 : f32 to vector<1x128xf32>
    %5 = arith.mulf %4, %2 : vector<1x128xf32>
    %6 = arith.mulf %5, %0 : vector<1x128xf32>
    %7 = arith.addf %1, %6 : vector<1x128xf32>
    %cst_3 = arith.constant 1.000000e+00 : f32
    %8 = vector.broadcast %cst_3 : f32 to vector<1x128xf32>
    %9 = arith.subf %8, %2 : vector<1x128xf32>
    %10 = arith.mulf %0, %9 : vector<1x128xf32>
    %c1 = arith.constant 1 : index
    %c0_4 = arith.constant 0 : index
    %11 = vector.load %arg2[%c1, %c0_4] : memref<20x128xf32, #tpu.memory_space<vmem>>, vector<1x128xf32>
    %c1_5 = arith.constant 1 : index
    %12 = memref.load %arg1[%c1_5] : memref<20xf32, #tpu.memory_space<smem>>
    %13 = vector.broadcast %12 : f32 to vector<1x128xf32>
    %14 = arith.mulf %13, %11 : vector<1x128xf32>
    %15 = arith.mulf %14, %10 : vector<1x128xf32>
    %16 = arith.addf %7, %15 : vector<1x128xf32>
    %cst_6 = arith.constant 1.000000e+00 : f32
    %17 = vector.broadcast %cst_6 : f32 to vector<1x128xf32>
    %18 = arith.subf %17, %11 : vector<1x128xf32>
    %19 = arith.mulf %10, %18 : vector<1x128xf32>
    %c2 = arith.constant 2 : index
    %c0_7 = arith.constant 0 : index
    %20 = vector.load %arg2[%c2, %c0_7] : memref<20x128xf32, #tpu.memory_space<vmem>>, vector<1x128xf32>
    %c2_8 = arith.constant 2 : index
    %21 = memref.load %arg1[%c2_8] : memref<20xf32, #tpu.memory_space<smem>>
    %22 = vector.broadcast %21 : f32 to vector<1x128xf32>
    %23 = arith.mulf %22, %20 : vector<1x128xf32>
    %24 = arith.mulf %23, %19 : vector<1x128xf32>
    %25 = arith.addf %16, %24 : vector<1x128xf32>
    %cst_9 = arith.constant 1.000000e+00 : f32
    %26 = vector.broadcast %cst_9 : f32 to vector<1x128xf32>
    %27 = arith.subf %26, %20 : vector<1x128xf32>
    %28 = arith.mulf %19, %27 : vector<1x128xf32>
    %c3 = arith.constant 3 : index
    %c0_10 = arith.constant 0 : index
    %29 = vector.load %arg2[%c3, %c0_10] : memref<20x128xf32, #tpu.memory_space<vmem>>, vector<1x128xf32>
    %c3_11 = arith.constant 3 : index
    %30 = memref.load %arg1[%c3_11] : memref<20xf32, #tpu.memory_space<smem>>
    %31 = vector.broadcast %30 : f32 to vector<1x128xf32>
    %32 = arith.mulf %31, %29 : vector<1x128xf32>
    %33 = arith.mulf %32, %28 : vector<1x128xf32>
    %34 = arith.addf %25, %33 : vector<1x128xf32>
    %cst_12 = arith.constant 1.000000e+00 : f32
    %35 = vector.broadcast %cst_12 : f32 to vector<1x128xf32>
    %36 = arith.subf %35, %29 : vector<1x128xf32>
    %37 = arith.mulf %28, %36 : vector<1x128xf32>
    %c4 = arith.constant 4 : index
    %c0_13 = arith.constant 0 : index
    %38 = vector.load %arg2[%c4, %c0_13] : memref<20x128xf32, #tpu.memory_space<vmem>>, vector<1x128xf32>
    %c4_14 = arith.constant 4 : index
    %39 = memref.load %arg1[%c4_14] : memref<20xf32, #tpu.memory_space<smem>>
    %40 = vector.broadcast %39 : f32 to vector<1x128xf32>
    %41 = arith.mulf %40, %38 : vector<1x128xf32>
    %42 = arith.mulf %41, %37 : vector<1x128xf32>
    %43 = arith.addf %34, %42 : vector<1x128xf32>
    %cst_15 = arith.constant 1.000000e+00 : f32
    %44 = vector.broadcast %cst_15 : f32 to vector<1x128xf32>
    %45 = arith.subf %44, %38 : vector<1x128xf32>
    %46 = arith.mulf %37, %45 : vector<1x128xf32>
    %c5 = arith.constant 5 : index
    %c0_16 = arith.constant 0 : index
    %47 = vector.load %arg2[%c5, %c0_16] : memref<20x128xf32, #tpu.memory_space<vmem>>, vector<1x128xf32>
    %c5_17 = arith.constant 5 : index
    %48 = memref.load %arg1[%c5_17] : memref<20xf32, #tpu.memory_space<smem>>
    %49 = vector.broadcast %48 : f32 to vector<1x128xf32>
    %50 = arith.mulf %49, %47 : vector<1x128xf32>
    %51 = arith.mulf %50, %46 : vector<1x128xf32>
    %52 = arith.addf %43, %51 : vector<1x128xf32>
    %cst_18 = arith.constant 1.000000e+00 : f32
    %53 = vector.broadcast %cst_18 : f32 to vector<1x128xf32>
    %54 = arith.subf %53, %47 : vector<1x128xf32>
    %55 = arith.mulf %46, %54 : vector<1x128xf32>
    %c6 = arith.constant 6 : index
    %c0_19 = arith.constant 0 : index
    %56 = vector.load %arg2[%c6, %c0_19] : memref<20x128xf32, #tpu.memory_space<vmem>>, vector<1x128xf32>
    %c6_20 = arith.constant 6 : index
    %57 = memref.load %arg1[%c6_20] : memref<20xf32, #tpu.memory_space<smem>>
    %58 = vector.broadcast %57 : f32 to vector<1x128xf32>
    %59 = arith.mulf %58, %56 : vector<1x128xf32>
    %60 = arith.mulf %59, %55 : vector<1x128xf32>
    %61 = arith.addf %52, %60 : vector<1x128xf32>
    %cst_21 = arith.constant 1.000000e+00 : f32
    %62 = vector.broadcast %cst_21 : f32 to vector<1x128xf32>
    %63 = arith.subf %62, %56 : vector<1x128xf32>
    %64 = arith.mulf %55, %63 : vector<1x128xf32>
    %c7 = arith.constant 7 : index
    %c0_22 = arith.constant 0 : index
    %65 = vector.load %arg2[%c7, %c0_22] : memref<20x128xf32, #tpu.memory_space<vmem>>, vector<1x128xf32>
    %c7_23 = arith.constant 7 : index
    %66 = memref.load %arg1[%c7_23] : memref<20xf32, #tpu.memory_space<smem>>
    %67 = vector.broadcast %66 : f32 to vector<1x128xf32>
    %68 = arith.mulf %67, %65 : vector<1x128xf32>
    %69 = arith.mulf %68, %64 : vector<1x128xf32>
    %70 = arith.addf %61, %69 : vector<1x128xf32>
    %cst_24 = arith.constant 1.000000e+00 : f32
    %71 = vector.broadcast %cst_24 : f32 to vector<1x128xf32>
    %72 = arith.subf %71, %65 : vector<1x128xf32>
    %73 = arith.mulf %64, %72 : vector<1x128xf32>
    %c8 = arith.constant 8 : index
    %c0_25 = arith.constant 0 : index
    %74 = vector.load %arg2[%c8, %c0_25] : memref<20x128xf32, #tpu.memory_space<vmem>>, vector<1x128xf32>
    %c8_26 = arith.constant 8 : index
    %75 = memref.load %arg1[%c8_26] : memref<20xf32, #tpu.memory_space<smem>>
    %76 = vector.broadcast %75 : f32 to vector<1x128xf32>
    %77 = arith.mulf %76, %74 : vector<1x128xf32>
    %78 = arith.mulf %77, %73 : vector<1x128xf32>
    %79 = arith.addf %70, %78 : vector<1x128xf32>
    %cst_27 = arith.constant 1.000000e+00 : f32
    %80 = vector.broadcast %cst_27 : f32 to vector<1x128xf32>
    %81 = arith.subf %80, %74 : vector<1x128xf32>
    %82 = arith.mulf %73, %81 : vector<1x128xf32>
    %c9 = arith.constant 9 : index
    %c0_28 = arith.constant 0 : index
    %83 = vector.load %arg2[%c9, %c0_28] : memref<20x128xf32, #tpu.memory_space<vmem>>, vector<1x128xf32>
    %c9_29 = arith.constant 9 : index
    %84 = memref.load %arg1[%c9_29] : memref<20xf32, #tpu.memory_space<smem>>
    %85 = vector.broadcast %84 : f32 to vector<1x128xf32>
    %86 = arith.mulf %85, %83 : vector<1x128xf32>
    %87 = arith.mulf %86, %82 : vector<1x128xf32>
    %88 = arith.addf %79, %87 : vector<1x128xf32>
    %cst_30 = arith.constant 1.000000e+00 : f32
    %89 = vector.broadcast %cst_30 : f32 to vector<1x128xf32>
    %90 = arith.subf %89, %83 : vector<1x128xf32>
    %91 = arith.mulf %82, %90 : vector<1x128xf32>
    %c10 = arith.constant 10 : index
    %c0_31 = arith.constant 0 : index
    %92 = vector.load %arg2[%c10, %c0_31] : memref<20x128xf32, #tpu.memory_space<vmem>>, vector<1x128xf32>
    %c10_32 = arith.constant 10 : index
    %93 = memref.load %arg1[%c10_32] : memref<20xf32, #tpu.memory_space<smem>>
    %94 = vector.broadcast %93 : f32 to vector<1x128xf32>
    %95 = arith.mulf %94, %92 : vector<1x128xf32>
    %96 = arith.mulf %95, %91 : vector<1x128xf32>
    %97 = arith.addf %88, %96 : vector<1x128xf32>
    %cst_33 = arith.constant 1.000000e+00 : f32
    %98 = vector.broadcast %cst_33 : f32 to vector<1x128xf32>
    %99 = arith.subf %98, %92 : vector<1x128xf32>
    %100 = arith.mulf %91, %99 : vector<1x128xf32>
    %c11 = arith.constant 11 : index
    %c0_34 = arith.constant 0 : index
    %101 = vector.load %arg2[%c11, %c0_34] : memref<20x128xf32, #tpu.memory_space<vmem>>, vector<1x128xf32>
    %c11_35 = arith.constant 11 : index
    %102 = memref.load %arg1[%c11_35] : memref<20xf32, #tpu.memory_space<smem>>
    %103 = vector.broadcast %102 : f32 to vector<1x128xf32>
    %104 = arith.mulf %103, %101 : vector<1x128xf32>
    %105 = arith.mulf %104, %100 : vector<1x128xf32>
    %106 = arith.addf %97, %105 : vector<1x128xf32>
    %cst_36 = arith.constant 1.000000e+00 : f32
    %107 = vector.broadcast %cst_36 : f32 to vector<1x128xf32>
    %108 = arith.subf %107, %101 : vector<1x128xf32>
    %109 = arith.mulf %100, %108 : vector<1x128xf32>
    %c12 = arith.constant 12 : index
    %c0_37 = arith.constant 0 : index
    %110 = vector.load %arg2[%c12, %c0_37] : memref<20x128xf32, #tpu.memory_space<vmem>>, vector<1x128xf32>
    %c12_38 = arith.constant 12 : index
    %111 = memref.load %arg1[%c12_38] : memref<20xf32, #tpu.memory_space<smem>>
    %112 = vector.broadcast %111 : f32 to vector<1x128xf32>
    %113 = arith.mulf %112, %110 : vector<1x128xf32>
    %114 = arith.mulf %113, %109 : vector<1x128xf32>
    %115 = arith.addf %106, %114 : vector<1x128xf32>
    %cst_39 = arith.constant 1.000000e+00 : f32
    %116 = vector.broadcast %cst_39 : f32 to vector<1x128xf32>
    %117 = arith.subf %116, %110 : vector<1x128xf32>
    %118 = arith.mulf %109, %117 : vector<1x128xf32>
    %c13 = arith.constant 13 : index
    %c0_40 = arith.constant 0 : index
    %119 = vector.load %arg2[%c13, %c0_40] : memref<20x128xf32, #tpu.memory_space<vmem>>, vector<1x128xf32>
    %c13_41 = arith.constant 13 : index
    %120 = memref.load %arg1[%c13_41] : memref<20xf32, #tpu.memory_space<smem>>
    %121 = vector.broadcast %120 : f32 to vector<1x128xf32>
    %122 = arith.mulf %121, %119 : vector<1x128xf32>
    %123 = arith.mulf %122, %118 : vector<1x128xf32>
    %124 = arith.addf %115, %123 : vector<1x128xf32>
    %cst_42 = arith.constant 1.000000e+00 : f32
    %125 = vector.broadcast %cst_42 : f32 to vector<1x128xf32>
    %126 = arith.subf %125, %119 : vector<1x128xf32>
    %127 = arith.mulf %118, %126 : vector<1x128xf32>
    %c14 = arith.constant 14 : index
    %c0_43 = arith.constant 0 : index
    %128 = vector.load %arg2[%c14, %c0_43] : memref<20x128xf32, #tpu.memory_space<vmem>>, vector<1x128xf32>
    %c14_44 = arith.constant 14 : index
    %129 = memref.load %arg1[%c14_44] : memref<20xf32, #tpu.memory_space<smem>>
    %130 = vector.broadcast %129 : f32 to vector<1x128xf32>
    %131 = arith.mulf %130, %128 : vector<1x128xf32>
    %132 = arith.mulf %131, %127 : vector<1x128xf32>
    %133 = arith.addf %124, %132 : vector<1x128xf32>
    %cst_45 = arith.constant 1.000000e+00 : f32
    %134 = vector.broadcast %cst_45 : f32 to vector<1x128xf32>
    %135 = arith.subf %134, %128 : vector<1x128xf32>
    %136 = arith.mulf %127, %135 : vector<1x128xf32>
    %c15 = arith.constant 15 : index
    %c0_46 = arith.constant 0 : index
    %137 = vector.load %arg2[%c15, %c0_46] : memref<20x128xf32, #tpu.memory_space<vmem>>, vector<1x128xf32>
    %c15_47 = arith.constant 15 : index
    %138 = memref.load %arg1[%c15_47] : memref<20xf32, #tpu.memory_space<smem>>
    %139 = vector.broadcast %138 : f32 to vector<1x128xf32>
    %140 = arith.mulf %139, %137 : vector<1x128xf32>
    %141 = arith.mulf %140, %136 : vector<1x128xf32>
    %142 = arith.addf %133, %141 : vector<1x128xf32>
    %cst_48 = arith.constant 1.000000e+00 : f32
    %143 = vector.broadcast %cst_48 : f32 to vector<1x128xf32>
    %144 = arith.subf %143, %137 : vector<1x128xf32>
    %145 = arith.mulf %136, %144 : vector<1x128xf32>
    %c16 = arith.constant 16 : index
    %c0_49 = arith.constant 0 : index
    %146 = vector.load %arg2[%c16, %c0_49] : memref<20x128xf32, #tpu.memory_space<vmem>>, vector<1x128xf32>
    %c16_50 = arith.constant 16 : index
    %147 = memref.load %arg1[%c16_50] : memref<20xf32, #tpu.memory_space<smem>>
    %148 = vector.broadcast %147 : f32 to vector<1x128xf32>
    %149 = arith.mulf %148, %146 : vector<1x128xf32>
    %150 = arith.mulf %149, %145 : vector<1x128xf32>
    %151 = arith.addf %142, %150 : vector<1x128xf32>
    %cst_51 = arith.constant 1.000000e+00 : f32
    %152 = vector.broadcast %cst_51 : f32 to vector<1x128xf32>
    %153 = arith.subf %152, %146 : vector<1x128xf32>
    %154 = arith.mulf %145, %153 : vector<1x128xf32>
    %c17 = arith.constant 17 : index
    %c0_52 = arith.constant 0 : index
    %155 = vector.load %arg2[%c17, %c0_52] : memref<20x128xf32, #tpu.memory_space<vmem>>, vector<1x128xf32>
    %c17_53 = arith.constant 17 : index
    %156 = memref.load %arg1[%c17_53] : memref<20xf32, #tpu.memory_space<smem>>
    %157 = vector.broadcast %156 : f32 to vector<1x128xf32>
    %158 = arith.mulf %157, %155 : vector<1x128xf32>
    %159 = arith.mulf %158, %154 : vector<1x128xf32>
    %160 = arith.addf %151, %159 : vector<1x128xf32>
    %cst_54 = arith.constant 1.000000e+00 : f32
    %161 = vector.broadcast %cst_54 : f32 to vector<1x128xf32>
    %162 = arith.subf %161, %155 : vector<1x128xf32>
    %163 = arith.mulf %154, %162 : vector<1x128xf32>
    %c18 = arith.constant 18 : index
    %c0_55 = arith.constant 0 : index
    %164 = vector.load %arg2[%c18, %c0_55] : memref<20x128xf32, #tpu.memory_space<vmem>>, vector<1x128xf32>
    %c18_56 = arith.constant 18 : index
    %165 = memref.load %arg1[%c18_56] : memref<20xf32, #tpu.memory_space<smem>>
    %166 = vector.broadcast %165 : f32 to vector<1x128xf32>
    %167 = arith.mulf %166, %164 : vector<1x128xf32>
    %168 = arith.mulf %167, %163 : vector<1x128xf32>
    %169 = arith.addf %160, %168 : vector<1x128xf32>
    %cst_57 = arith.constant 1.000000e+00 : f32
    %170 = vector.broadcast %cst_57 : f32 to vector<1x128xf32>
    %171 = arith.subf %170, %164 : vector<1x128xf32>
    %172 = arith.mulf %163, %171 : vector<1x128xf32>
    %c19 = arith.constant 19 : index
    %c0_58 = arith.constant 0 : index
    %173 = vector.load %arg2[%c19, %c0_58] : memref<20x128xf32, #tpu.memory_space<vmem>>, vector<1x128xf32>
    %c19_59 = arith.constant 19 : index
    %174 = memref.load %arg1[%c19_59] : memref<20xf32, #tpu.memory_space<smem>>
    %175 = vector.broadcast %174 : f32 to vector<1x128xf32>
    %176 = arith.mulf %175, %173 : vector<1x128xf32>
    %177 = arith.mulf %176, %172 : vector<1x128xf32>
    %178 = arith.addf %169, %177 : vector<1x128xf32>
    %cst_60 = arith.constant 1.000000e+00 : f32
    %179 = vector.broadcast %cst_60 : f32 to vector<1x128xf32>
    %180 = arith.subf %179, %178 : vector<1x128xf32>
    %c0_61 = arith.constant 0 : index
    %c0_62 = arith.constant 0 : index
    %181 = vector.load %arg3[%c0_61, %c0_62] : memref<1x128xf32, #tpu.memory_space<vmem>>, vector<1x128xf32>
    tpu.vector_store %arg3[%c0_61, %c0_62], %180 {strides = array<i32>} : memref<1x128xf32, #tpu.memory_space<vmem>>, vector<1x128xf32>,
    return
  }
  func.func @transform_0(%arg0: i32) -> i32 {
    %c0_i32 = arith.constant 0 : i32
    %c0_i32_0 = arith.constant 0 : i32
    return %c0_i32 : i32
  }
  func.func @transform_1(%arg0: i32) -> (i32, i32) {
    %c0_i32 = arith.constant 0 : i32
    %c0_i32_0 = arith.constant 0 : i32
    return %c0_i32, %arg0 : i32, i32
  }
  func.func @transform_2(%arg0: i32) -> (i32, i32) {
    %c0_i32 = arith.constant 0 : i32
    %c0_i32_0 = arith.constant 0 : i32
    return %c0_i32, %arg0 : i32, i32
  }
}

</mosaic_0001>

<bundles_post_ra>
// kernel: tpu_custom_call.1
= control target key start
LH: loop header
LB: loop body
LE: loop exit
PB: predicated region body
PF: predicated region fallthrough
CT: control target
= control target key end

     0   :  { %7 = vsyncpa [#allocation5], 0  ;;  %s357_s0 = inlined_call_operand.hbm [shape: f32[20], index: 0, kind: input, shape index: {}]   ;;  %s358_s1 = inlined_call_operand.hbm [shape: f32[20,128], index: 1, kind: input, shape index: {}]   ;;  %s359_s2 = inlined_call_operand.hbm [shape: f32[1,128], index: 2, kind: output, shape index: {}]  }
   0x1   :  { %8 = vsyncpa [#allocation3], 0 }
   0x2   :  { %9 = vsyncpa [#allocation4], 0  ;;  %s289_s9 = smov [#allocation2]   ;;  %s290_s12 = smov [#allocation6]  }
   0x3   :  { %17 = dma.hbm_to_smem %s357_s0, 16, %s289_s9, [#allocation5]  }
   0x4   :  { %s23_s13 = sshll.u32 %s290_s12, 4  ;;  %s24_s13 = int_to_ptr.vmem [resolvable:$true] %s23_s13 }
   0x5   :  { %s251_s14 = scalar_lea.vmem %s24_s13, 384  ;;  %p256_p1 = scmp.lt.s32.totalorder %s24_s13, %s24_s13 }
   0x6   :  { %p252_p0 = scmp.ne.s32.totalorder %s24_s13, %s251_s14  ;;  %p257_p2 = scmp.lt.s32.totalorder %s251_s14, %s251_s14 }
   0x8   :  { %p258_p3 = por %p257_p2, %p256_p1 }
   0xa   :  { %p259_p4 = pnand %p258_p3, %p252_p0 }
   0xc   :  { %262 = shalt.err (!%p259_p4)
}
   0xd   :  { %s291_s15 = smov 128   ;;  %s292_s16 = smov 8  }
   0xe   :  { %29 = dma.hbm_to_vmem [thread:$0]  %s358_s1, 384, %s24_s13, [#allocation3], %s291_s15, %s291_s15, %s292_s16  }
   0xf   :  { %283 = dma.done.wait [#allocation5], 16  }
  0x10   :  { %284 = vsyncadd [#allocation5], 4294967280 }
  0x11   :  { %285 = dma.done.wait [#allocation3], 384  }
  0x12   :  { %286 = vsyncadd [#allocation3], 4294966912 }
  0x13   :  { %36 = sfence }
  0x14   :  { %v37_v0 = vld [vmem:[#allocation6] sm:$0x1]  ;;  %s38_s0 = sld [smem:[#allocation2]]  ;;  %v43_v1 = vld [vmem:[#allocation6 + $0x1] sm:$0x1]  ;;  %s293_s9 = smov [#allocation7]  }
  0x15   :  { %v42_v2 = vsub.f32 1.0, %v37_v0  ;;  %s211_s19 = sld [smem:[#allocation2 + $0x1]]  ;;  %v49_v3 = vsub.f32 1.0, %v43_v1  ;;  %v51_v4 = vld [vmem:[#allocation6 + $0x2] sm:$0x1]  ;;  %s201_s10 = sshll.u32 %s293_s9, 4  ;;  %s202_s10 = int_to_ptr.vmem [resolvable:$true] %s201_s10 }
  0x16   :  { %s212_s20 = sld [smem:[#allocation2 + $0x2]]  ;;  %v57_v5 = vsub.f32 1.0, %v51_v4  ;;  %v59_v6 = vld [vmem:[#allocation6 + $0x3] sm:$0x1]  ;;  %v67_v9 = vld [vmem:[#allocation6 + $0x4] sm:$0x1]  ;;  %p268_p6 = scmp.lt.s32.totalorder %s202_s10, %s202_s10 }
  0x17   :  { %v50_v7 = vmul.f32 %v49_v3, %v42_v2  ;;  %s213_s21 = sld [smem:[#allocation2 + $0x3]]  ;;  %v65_v8 = vsub.f32 1.0, %v59_v6  ;;  %v75_v10 = vld [vmem:[#allocation6 + $0x5] sm:$0x1]  ;;  %v73_v12 = vsub.f32 1.0, %v67_v9  ;;  %s263_s11 = scalar_lea.vmem %s202_s10, 16 }
  0x18   :  { %s214_s1 = sld [smem:[#allocation2 + $0x4]]  ;;  %v83_v14 = vld [vmem:[#allocation6 + $0x6] sm:$0x1]  ;;  %v81_v17 = vsub.f32 1.0, %v75_v10  ;;  %v91_v18 = vld [vmem:[#allocation6 + $0x7] sm:$0x1]  ;;  %p264_p5 = scmp.ne.s32.totalorder %s202_s10, %s263_s11 }
  0x19   :  { %v58_v11 = vmul.f32 %v57_v5, %v50_v7  ;;  %s215_s22 = sld [smem:[#allocation2 + $0x5]]  ;;  %v89_v25 = vsub.f32 1.0, %v83_v14  ;;  %v97_v29 = vsub.f32 1.0, %v91_v18  ;;  %v99_v30 = vld [vmem:[#allocation6 + $0x8] sm:$0x1]  ;;  %s267_s12 = scalar_lea.vmem %s202_s10, 32 }
  0x1a   :  { %v39_v13 = vstv %s38_s0  ;;  %s315_s23 = sld [smem:[#allocation2 + $0x6]]  ;;  %v107_v39 = vld [vmem:[#allocation6 + $0x9] sm:$0x1]  ;;  %v105_v42 = vsub.f32 1.0, %v99_v30  ;;  %v115_v46 = vld [vmem:[#allocation6 + $0xa] sm:$0x1]  ;;  %p269_p7 = scmp.lt.s32.totalorder %s267_s12, %s263_s11 }
  0x1b   :  { %v45_v15 = vstv %s211_s19  ;;  %v66_v16 = vmul.f32 %v65_v8, %v58_v11  ;;  %s317_s24 = sld [smem:[#allocation2 + $0x7]]  ;;  %v40_v19 = vmul.f32 %v39_v13, %v37_v0  ;;  %v113_v49 = vsub.f32 1.0, %v107_v39  ;;  %v123_v53 = vld [vmem:[#allocation6 + $0xb] sm:$0x1]  ;;  %v131_v60 = vld [vmem:[#allocation6 + $0xc] sm:$0x1] }
  0x1c   :  { %v46_v20 = vmul.f32 %v45_v15, %v43_v1  ;;  %v53_v21 = vstv %s212_s20  ;;  %s319_s25 = sld [smem:[#allocation2 + $0x8]]  ;;  %v121_v56 = vsub.f32 1.0, %v115_v46  ;;  %v129_v63 = vsub.f32 1.0, %v123_v53  ;;  %v139_v3 = vld [vmem:[#allocation6 + $0xd] sm:$0x1]  ;;  %p270_p8 = por %p269_p7, %p268_p6 }
  0x1d   :  { %v54_v22 = vmul.f32 %v53_v21, %v51_v4  ;;  %v61_v23 = vstv %s213_s21  ;;  %v74_v24 = vmul.f32 %v73_v12, %v66_v16  ;;  %s321_s26 = sld [smem:[#allocation2 + $0x9]]  ;;  %v145_v13 = vsub.f32 1.0, %v139_v3 }
  0x1e   :  { %v47_v26 = vmul.f32 %v46_v20, %v42_v2  ;;  %v62_v27 = vmul.f32 %v61_v23, %v59_v6  ;;  %v69_v28 = vstv %s214_s1  ;;  %s323_s27 = sld [smem:[#allocation2 + $0xa]]  ;;  %v137_v6 = vsub.f32 1.0, %v131_v60  ;;  %p271_p9 = pnand %p270_p8, %p264_p5 }
  0x1f   :  { %v55_v31 = vmul.f32 %v54_v22, %v50_v7  ;;  %v70_v32 = vmul.f32 %v69_v28, %v67_v9  ;;  %v77_v33 = vstv %s215_s22  ;;  %v82_v34 = vmul.f32 %v81_v17, %v74_v24  ;;  %s327_s28 = sld [smem:[#allocation2 + $0xb]]  ;;  %v155_v17 = vld [vmem:[#allocation6 + $0xf] sm:$0x1] }
  0x20   :  { %v48_v35 = vadd.f32 %v47_v26, %v40_v19  ;;  %v63_v36 = vmul.f32 %v62_v27, %v58_v11  ;;  %v78_v37 = vmul.f32 %v77_v33, %v75_v10  ;;  %v85_v38 = vstv %s315_s23  ;;  %s330_s29 = sld [smem:[#allocation2 + $0xc]]  ;;  %v147_v10 = vld [vmem:[#allocation6 + $0xe] sm:$0x1] }
  0x21   :  { %v90_v40 = vmul.f32 %v89_v25, %v82_v34  ;;  %v93_v41 = vstv %s317_s24  ;;  %v71_v44 = vmul.f32 %v70_v32, %v66_v16  ;;  %v86_v45 = vmul.f32 %v85_v38, %v83_v14  ;;  %s333_s30 = sld [smem:[#allocation2 + $0xd]] }
  0x22   :  { %v56_v43 = vadd.f32 %v55_v31, %v48_v35  ;;  %v101_v48 = vstv %s319_s25  ;;  %v79_v51 = vmul.f32 %v78_v37, %v74_v24  ;;  %v94_v52 = vmul.f32 %v93_v41, %v91_v18  ;;  %s336_s3 = sld [smem:[#allocation2 + $0xe]]  ;;  %v163_v24 = vld [vmem:[#allocation6 + $0x10] sm:$0x1] }
  0x23   :  { %v98_v47 = vmul.f32 %v97_v29, %v90_v40  ;;  %v109_v55 = vstv %s321_s26  ;;  %v87_v58 = vmul.f32 %v86_v45, %v82_v34  ;;  %v102_v59 = vmul.f32 %v101_v48, %v99_v30  ;;  %s338_s4 = sld [smem:[#allocation2 + $0xf]]  ;;  %v171_v34 = vld [vmem:[#allocation6 + $0x11] sm:$0x1] }
  0x24   :  { %v64_v50 = vadd.f32 %v63_v36, %v56_v43  ;;  %v117_v62 = vstv %s323_s27  ;;  %v95_v1 = vmul.f32 %v94_v52, %v90_v40  ;;  %v110_v2 = vmul.f32 %v109_v55, %v107_v39  ;;  %s342_s5 = sld [smem:[#allocation2 + $0x10]] }
  0x25   :  { %v106_v54 = vmul.f32 %v105_v42, %v98_v47  ;;  %v125_v5 = vstv %s327_s28  ;;  %v103_v8 = vmul.f32 %v102_v59, %v98_v47  ;;  %v118_v9 = vmul.f32 %v117_v62, %v115_v46  ;;  %s344_s6 = sld [smem:[#allocation2 + $0x11]]  ;;  %v179_v46 = vld [vmem:[#allocation6 + $0x12] sm:$0x1] }
  0x26   :  { %v72_v57 = vadd.f32 %v71_v44, %v64_v50  ;;  %v133_v12 = vstv %s330_s29  ;;  %v126_v16 = vmul.f32 %v125_v5, %v123_v53  ;;  %v153_v20 = vsub.f32 1.0, %v147_v10  ;;  %s348_s7 = sld [smem:[#allocation2 + $0x12]] }
  0x27   :  { %v114_v61 = vmul.f32 %v113_v49, %v106_v54  ;;  %v111_v15 = vmul.f32 %v110_v2, %v106_v54  ;;  %v141_v19 = vstv %s333_s30  ;;  %v134_v23 = vmul.f32 %v133_v12, %v131_v60  ;;  %s229_s8 = sld [smem:[#allocation2 + $0x13]] }
  0x28   :  { %v80_v0 = vadd.f32 %v79_v51, %v72_v57  ;;  %v149_v26 = vstv %s336_s3  ;;  %v161_v27 = vsub.f32 1.0, %v155_v17  ;;  %v142_v30 = vmul.f32 %v141_v19, %v139_v3 }
  0x29   :  { %v122_v4 = vmul.f32 %v121_v56, %v114_v61  ;;  %v119_v22 = vmul.f32 %v118_v9, %v114_v61  ;;  %v157_v31 = vstv %s338_s4  ;;  %v169_v33 = vsub.f32 1.0, %v163_v24  ;;  %v187_v56 = vld [vmem:[#allocation6 + $0x13] sm:$0x1] }
  0x2a   :  { %v88_v7 = vadd.f32 %v87_v58, %v80_v0  ;;  %v150_v37 = vmul.f32 %v149_v26, %v147_v10  ;;  %v158_v38 = vmul.f32 %v157_v31, %v155_v17  ;;  %v165_v40 = vstv %s342_s5 }
  0x2b   :  { %v130_v11 = vmul.f32 %v129_v63, %v122_v4  ;;  %v127_v29 = vmul.f32 %v126_v16, %v122_v4  ;;  %v173_v43 = vstv %s344_s6  ;;  %v177_v44 = vsub.f32 1.0, %v171_v34 }
  0x2c   :  { %v96_v14 = vadd.f32 %v95_v1, %v88_v7  ;;  %v166_v49 = vmul.f32 %v165_v40, %v163_v24  ;;  %v174_v50 = vmul.f32 %v173_v43, %v171_v34  ;;  %v181_v51 = vstv %s348_s7 }
  0x2d   :  { %v138_v18 = vmul.f32 %v137_v6, %v130_v11  ;;  %v135_v36 = vmul.f32 %v134_v23, %v130_v11  ;;  %v185_v55 = vsub.f32 1.0, %v179_v46  ;;  %v189_v57 = vstv %s229_s8 }
  0x2e   :  { %v104_v21 = vadd.f32 %v103_v8, %v96_v14  ;;  %v182_v60 = vmul.f32 %v181_v51, %v179_v46  ;;  %v190_v0 = vmul.f32 %v189_v57, %v187_v56 }
  0x2f   :  { %v146_v25 = vmul.f32 %v145_v13, %v138_v18  ;;  %v143_v42 = vmul.f32 %v142_v30, %v138_v18 }
  0x30   :  { %v112_v28 = vadd.f32 %v111_v15, %v104_v21 }
  0x31   :  { %v154_v32 = vmul.f32 %v153_v20, %v146_v25  ;;  %v151_v48 = vmul.f32 %v150_v37, %v146_v25 }
  0x32   :  { %v120_v35 = vadd.f32 %v119_v22, %v112_v28 }
  0x33   :  { %v162_v39 = vmul.f32 %v161_v27, %v154_v32  ;;  %v159_v53 = vmul.f32 %v158_v38, %v154_v32 }
  0x34   :  { %v128_v41 = vadd.f32 %v127_v29, %v120_v35 }
  0x35   :  { %v170_v45 = vmul.f32 %v169_v33, %v162_v39  ;;  %v167_v59 = vmul.f32 %v166_v49, %v162_v39 }
  0x36   :  { %v136_v47 = vadd.f32 %v135_v36, %v128_v41 }
  0x37   :  { %v178_v54 = vmul.f32 %v177_v44, %v170_v45  ;;  %v175_v62 = vmul.f32 %v174_v50, %v170_v45 }
  0x38   :  { %v144_v52 = vadd.f32 %v143_v42, %v136_v47 }
  0x39   :  { %v186_v63 = vmul.f32 %v185_v55, %v178_v54  ;;  %v183_v2 = vmul.f32 %v182_v60, %v178_v54 }
  0x3a   :  { %v152_v58 = vadd.f32 %v151_v48, %v144_v52 }
  0x3b   :  { %v191_v4 = vmul.f32 %v190_v0, %v186_v63 }
  0x3c   :  { %v160_v61 = vadd.f32 %v159_v53, %v152_v58 }
  0x3e   :  { %v168_v1 = vadd.f32 %v167_v59, %v160_v61 }
  0x40   :  { %v176_v3 = vadd.f32 %v175_v62, %v168_v1 }
  0x42   :  { %v184_v5 = vadd.f32 %v183_v2, %v176_v3 }
  0x44   :  { %v192_v6 = vadd.f32 %v191_v4, %v184_v5 }
  0x46   :  { %v193_v7 = vsub.f32 1.0, %v192_v6 }
  0x48   :  { %194 = vst [vmem:[#allocation7] sm:$0x1] %v193_v7 }
  0x49   :  { %274 = shalt.err (!%p271_p9)
}
  0x4a   :  { %204 = dma.vmem_to_hbm [thread:$0]  %s202_s10, 16, %s359_s2, [#allocation4]  }
  0x4b   :  { %287 = dma.done.wait [#allocation4], 16  }
  0x4c   :  { %288 = vsyncadd [#allocation4], 4294967280 }
  0x4d   :  { %208 = vsyncpa [#allocation3], 1 }
  0x4e   :  { %209 = vsyncpa [#allocation4], 1 }
  0x4f   :  { %210 = vsyncpa [#allocation5], 1 }

</bundles_post_ra>
